<compile_context>
chip_gen: v5e
topology: v5e:2x2
jax: 0.10.0
libtpu: 0.0.40
codegen_flags: <defaults>
</compile_context>

<pallas_src>
import functools

import jax
import jax.numpy as jnp
from jax.experimental import pallas as pl
from jax.experimental.pallas import tpu as pltpu


# ---------------------------------------------------------------------------
# Fused AttentionBlock kernel
# ---------------------------------------------------------------------------
def _attention_block_kernel(g_ref, x_ref, wg_ref, wx_ref, b_ref, wp_ref, bp_ref,
                            o_ref):
    """Fully fused attention gate for one (batch-block, HW-tile) step.

    Layout: channels on sublanes, H*W on lanes (lane-dense).
      g_ref : (Bblk, Cg,  T)   gating-signal tile
      x_ref : (Bblk, Cx,  T)   skip-connection tile
      wg_ref: (Cint, Cg)       BN-folded W_g 1x1 conv weight (bf16)
      wx_ref: (Cint, Cx)       BN-folded W_x 1x1 conv weight (bf16)
      b_ref : (Cint, 1)        combined folded bias (b_g + b_x), f32
      wp_ref: (1, Cint)        BN-folded psi weight row (bf16)
      bp_ref: (1, 1)           folded psi bias, f32
      o_ref : (Bblk, Cx,  T)   gated output tile
    """
    b_blk = g_ref.shape[0]
    for b in range(b_blk):                       # static unroll over batch block
        g = g_ref[b]                             # (Cg, T)
        x = x_ref[b]                             # (Cx, T)

        # g1 + x1 : two small-K MXU pushes, bf16 operands, f32 accumulation.
        s = jnp.dot(wg_ref[...], g.astype(jnp.bfloat16),
                    preferred_element_type=jnp.float32)
        s = s + jnp.dot(wx_ref[...], x.astype(jnp.bfloat16),
                        preferred_element_type=jnp.float32)
        s = s + b_ref[...]                       # (Cint, T)

        p = jnp.maximum(s, 0.0)                  # ReLU

        # psi = sigmoid(BN(conv1x1_{Cint->1}(p))) -- skinny MXU matmul.
        psi = jnp.dot(wp_ref[...], p.astype(jnp.bfloat16),
                      preferred_element_type=jnp.float32)        # (1, T)
        psi = jax.nn.sigmoid(psi + bp_ref[...])

        # Gate the skip connection; psi broadcast over channels (sublanes).
        o_ref[b] = (x.astype(jnp.float32) * psi).astype(o_ref.dtype)


# ---------------------------------------------------------------------------
# Host-side helpers
# ---------------------------------------------------------------------------
def _fold_bn_1x1(w, b, bn, eps=1e-5):
    """Fold eval-mode BatchNorm2d into a preceding 1x1 conv.

    w: (O, I, 1, 1) torch layout, b: (O,).  Returns (O, I) weight, (O,) bias.
    """
    scale = bn["gamma"] * jax.lax.rsqrt(bn["var"] + eps)
    w2 = w[:, :, 0, 0] * scale[:, None]
    b2 = (b - bn["mean"]) * scale + bn["beta"]
    return w2, b2


def _plan_tiles(n, hw, cg, cx, cint, elem_bytes,
                budget_bytes=24 << 20, max_lanes=32768, max_batch_block=32):
    """Pick (batch_block, lane_tile) from a VMEM budget.

    Approx VMEM per lane-column of one image: double-buffered g/x inputs and
    the output, plus ~4 f32 (Cint,)-tall intermediates (s, p, bf16 copies).
    Headroom up to vmem_limit_bytes covers the rest.
    """
    per_col = (cg + 2 * cx) * elem_bytes * 2 + cint * 4 * 4
    max_cols = min(max_lanes, max(128, budget_bytes // per_col))

    if hw <= max_cols:
        t = hw                                    # full-HW block (no padding)
        b_blk = max(1, min(n, max_batch_block, max_cols // max(hw, 1)))
        while n % b_blk:                          # keep the batch grid exact
            b_blk -= 1
    else:
        t = max(128, (max_cols // 128) * 128)     # lane-dense multiple of 128
        b_blk = 1

    # Keep >= 2 grid steps when possible so both v7x TensorCores get work.
    def steps(b, tt):
        return (n // b) * pl.cdiv(hw, tt)

    if steps(b_blk, t) < 2 and b_blk > 1:
        b_blk //= 2
        while n % b_blk:
            b_blk -= 1
    if steps(b_blk, t) < 2 and hw > 128:
        t = ((pl.cdiv(hw, 2) + 127) // 128) * 128

    return b_blk, t


def attention_block(g, x, params, *, eps=1e-5):
    """AttentionBlock.forward(g, x) -> x * psi, eval-mode BN semantics.

    g: (N, f_g, H, W), x: (N, f_l, H, W)  ->  (N, f_l, H, W)
    """
    n, cg, h, w = g.shape
    cx = x.shape[1]
    assert x.shape[0] == n and x.shape[2:] == (h, w)
    hw = h * w

    wg, bg = _fold_bn_1x1(params["wg_w"], params["wg_b"], params["wg_bn"], eps)
    wx, bx = _fold_bn_1x1(params["wx_w"], params["wx_b"], params["wx_bn"], eps)
    wp, bp = _fold_bn_1x1(params["psi_w"], params["psi_b"], params["psi_bn"], eps)
    cint = wg.shape[0]

    # NCHW kept as-is: channels -> sublanes, H*W -> lanes.  No host pad/slice.
    g3 = g.reshape(n, cg, hw)
    x3 = x.reshape(n, cx, hw)

    elem_bytes = jnp.dtype(x.dtype).itemsize
    b_blk, t = _plan_tiles(n, hw, cg, cx, cint, elem_bytes)
    grid = (n // b_blk, pl.cdiv(hw, t))

    out = pl.pallas_call(
        _attention_block_kernel,
        out_shape=jax.ShapeDtypeStruct((n, cx, hw), x.dtype),
        grid=grid,
        in_specs=[
            pl.BlockSpec((b_blk, cg, t), lambda i, j: (i, 0, j)),
            pl.BlockSpec((b_blk, cx, t), lambda i, j: (i, 0, j)),
            pl.BlockSpec((cint, cg), lambda i, j: (0, 0)),
            pl.BlockSpec((cint, cx), lambda i, j: (0, 0)),
            pl.BlockSpec((cint, 1), lambda i, j: (0, 0)),
            pl.BlockSpec((1, cint), lambda i, j: (0, 0)),
            pl.BlockSpec((1, 1), lambda i, j: (0, 0)),
        ],
        out_specs=pl.BlockSpec((b_blk, cx, t), lambda i, j: (i, 0, j)),
        compiler_params=pltpu.CompilerParams(
            dimension_semantics=("parallel", "parallel"),
            vmem_limit_bytes=48 * 1024 * 1024),
    )(
        g3,
        x3,
        wg.astype(jnp.bfloat16),
        wx.astype(jnp.bfloat16),
        (bg + bx).reshape(cint, 1).astype(jnp.float32),
        wp.reshape(1, cint).astype(jnp.bfloat16),
        bp.reshape(1, 1).astype(jnp.float32),
    )
    return out.reshape(n, cx, h, w)


# ---------------------------------------------------------------------------
# Pure-JAX reference (unfolded BN) for correctness checking
# ---------------------------------------------------------------------------
def attention_block_reference(g, x, params, eps=1e-5):
    def conv_bn(t, w, b, bn):
        y = jnp.einsum("oc,nchw->nohw", w[:, :, 0, 0], t) + b[None, :, None, None]
        inv = jax.lax.rsqrt(bn["var"] + eps)
        return ((y - bn["mean"][None, :, None, None]) * inv[None, :, None, None]
                * bn["gamma"][None, :, None, None] + bn["beta"][None, :, None, None])

    g1 = conv_bn(g, params["wg_w"], params["wg_b"], params["wg_bn"])
    x1 = conv_bn(x, params["wx_w"], params["wx_b"], params["wx_bn"])
    p = jnp.maximum(g1 + x1, 0.0)
    psi = jax.nn.sigmoid(conv_bn(p, params["psi_w"], params["psi_b"], params["psi_bn"]))
    return x * psi


# ---------------------------------------------------------------------------
# Deterministic synthetic parameters (shapes follow AttentionBlock.__init__)
# ---------------------------------------------------------------------------
def make_params(key, f_g, f_l, f_int):
    keys = iter(jax.random.split(key, 32))

    def nrm(shape, s=0.05):
        return s * jax.random.normal(next(keys), shape, jnp.float32)

    def bn(c):
        return {"gamma": 1.0 + nrm((c,)), "beta": nrm((c,)),
                "mean": nrm((c,)), "var": 1.0 + jnp.abs(nrm((c,)))}

    return {
        "wg_w": nrm((f_int, f_g, 1, 1)), "wg_b": nrm((f_int,)), "wg_bn": bn(f_int),
        "wx_w": nrm((f_int, f_l, 1, 1)), "wx_b": nrm((f_int,)), "wx_bn": bn(f_int),
        "psi_w": nrm((1, f_int, 1, 1)), "psi_b": nrm((1,)), "psi_bn": bn(1),
    }


if __name__ == "__main__":
    key = jax.random.PRNGKey(0)
    kp, kg, kx = jax.random.split(key, 3)

    N, F_G, F_L, F_INT, H, W = 2, 32, 32, 16, 16, 16
    params = make_params(kp, F_G, F_L, F_INT)
    g = jax.random.normal(kg, (N, F_G, H, W), jnp.float32)
    x = jax.random.normal(kx, (N, F_L, H, W), jnp.float32)

    fwd = jax.jit(functools.partial(attention_block, params=params))
    y = jax.block_until_ready(fwd(g, x))

    assert y.shape == (N, F_L, H, W), y.shape
    assert bool(jnp.all(jnp.isfinite(y)))

    y_ref = attention_block_reference(g, x, params)
    max_err = float(jnp.max(jnp.abs(y - y_ref)))
    assert max_err < 3e-2, f"max abs error {max_err}"

    print("KERNEL_OK")
</pallas_src>

<mosaic_0001>
module attributes {stable_mosaic.version = 11 : i64} {
  func.func @_attention_block_kernel(%arg0: i32, %arg1: i32, %arg2: memref<1x32x256xf32, #tpu.memory_space<vmem>>, %arg3: memref<1x32x256xf32, #tpu.memory_space<vmem>>, %arg4: memref<16x32xbf16, #tpu.memory_space<vmem>>, %arg5: memref<16x32xbf16, #tpu.memory_space<vmem>>, %arg6: memref<16x1xf32, #tpu.memory_space<vmem>>, %arg7: memref<1x16xbf16, #tpu.memory_space<vmem>>, %arg8: memref<1x1xf32, #tpu.memory_space<vmem>>, %arg9: memref<1x32x256xf32, #tpu.memory_space<vmem>>) attributes {dimension_semantics = [#tpu.dimension_semantics<parallel>, #tpu.dimension_semantics<parallel>], iteration_bounds = array<i64: 2, 1>, scalar_prefetch = 0 : i64, scratch_operands = 0 : i64, tpu.core_type = #tpu.core_type<tc>, window_params = [{transform_indices = @transform_0, window_bounds = array<i64: 1, 32, 256>}, {transform_indices = @transform_1, window_bounds = array<i64: 1, 32, 256>}, {pipeline_mode = #tpu.pipeline_mode<synchronous>, transform_indices = @transform_2, window_bounds = array<i64: 16, 32>}, {pipeline_mode = #tpu.pipeline_mode<synchronous>, transform_indices = @transform_3, window_bounds = array<i64: 16, 32>}, {pipeline_mode = #tpu.pipeline_mode<synchronous>, transform_indices = @transform_4, window_bounds = array<i64: 16, 1>}, {pipeline_mode = #tpu.pipeline_mode<synchronous>, transform_indices = @transform_5, window_bounds = array<i64: 1, 16>}, {pipeline_mode = #tpu.pipeline_mode<synchronous>, transform_indices = @transform_6, window_bounds = array<i64: 1, 1>}, {transform_indices = @transform_7, window_bounds = array<i64: 1, 32, 256>}]} {
    %c0 = arith.constant 0 : index
    %c0_0 = arith.constant 0 : index
    %c0_1 = arith.constant 0 : index
    %0 = vector.load %arg2[%c0, %c0_0, %c0_1] : memref<1x32x256xf32, #tpu.memory_space<vmem>>, vector<1x32x256xf32>
    %1 = vector.shape_cast %0 : vector<1x32x256xf32> to vector<32x256xf32>
    %c0_2 = arith.constant 0 : index
    %c0_3 = arith.constant 0 : index
    %c0_4 = arith.constant 0 : index
    %2 = vector.load %arg3[%c0_2, %c0_3, %c0_4] : memref<1x32x256xf32, #tpu.memory_space<vmem>>, vector<1x32x256xf32>
    %3 = vector.shape_cast %2 : vector<1x32x256xf32> to vector<32x256xf32>
    %c0_5 = arith.constant 0 : index
    %c0_6 = arith.constant 0 : index
    %4 = vector.load %arg4[%c0_5, %c0_6] : memref<16x32xbf16, #tpu.memory_space<vmem>>, vector<16x32xbf16>
    %5 = arith.truncf %1 : vector<32x256xf32> to vector<32x256xbf16>
    %cst = arith.constant dense<0.000000e+00> : vector<16x256xf32>
    %6 = tpu.matmul %4, %5, %cst {dimension_numbers = #tpu.dot_dimension_numbers<[1], [0], [0], [1], [0, 0, 1, 1], [], []>} : vector<16x32xbf16>, vector<32x256xbf16>, vector<16x256xf32> -> vector<16x256xf32>
    %c0_7 = arith.constant 0 : index
    %c0_8 = arith.constant 0 : index
    %7 = vector.load %arg5[%c0_7, %c0_8] : memref<16x32xbf16, #tpu.memory_space<vmem>>, vector<16x32xbf16>
    %8 = arith.truncf %3 : vector<32x256xf32> to vector<32x256xbf16>
    %cst_9 = arith.constant dense<0.000000e+00> : vector<16x256xf32>
    %9 = tpu.matmul %7, %8, %cst_9 {dimension_numbers = #tpu.dot_dimension_numbers<[1], [0], [0], [1], [0, 0, 1, 1], [], []>} : vector<16x32xbf16>, vector<32x256xbf16>, vector<16x256xf32> -> vector<16x256xf32>
    %10 = arith.addf %6, %9 : vector<16x256xf32>
    %c0_10 = arith.constant 0 : index
    %c0_11 = arith.constant 0 : index
    %11 = vector.load %arg6[%c0_10, %c0_11] : memref<16x1xf32, #tpu.memory_space<vmem>>, vector<16x1xf32>
    %12 = vector.broadcast %11 : vector<16x1xf32> to vector<16x256xf32>
    %13 = arith.addf %10, %12 : vector<16x256xf32>
    %cst_12 = arith.constant 0.000000e+00 : f32
    %14 = vector.broadcast %cst_12 : f32 to vector<16x256xf32>
    %15 = arith.maximumf %13, %14 : vector<16x256xf32>
    %c0_13 = arith.constant 0 : index
    %c0_14 = arith.constant 0 : index
    %16 = vector.load %arg7[%c0_13, %c0_14] : memref<1x16xbf16, #tpu.memory_space<vmem>>, vector<1x16xbf16>
    %17 = arith.truncf %15 : vector<16x256xf32> to vector<16x256xbf16>
    %cst_15 = arith.constant dense<0.000000e+00> : vector<1x256xf32>
    %18 = tpu.matmul %16, %17, %cst_15 {dimension_numbers = #tpu.dot_dimension_numbers<[1], [0], [0], [1], [0, 0, 1, 1], [], []>} : vector<1x16xbf16>, vector<16x256xbf16>, vector<1x256xf32> -> vector<1x256xf32>
    %c0_16 = arith.constant 0 : index
    %c0_17 = arith.constant 0 : index
    %19 = vector.load %arg8[%c0_16, %c0_17] : memref<1x1xf32, #tpu.memory_space<vmem>>, vector<1x1xf32>
    %20 = vector.broadcast %19 : vector<1x1xf32> to vector<1x256xf32>
    %21 = arith.addf %18, %20 : vector<1x256xf32>
    %22 = arith.negf %21 : vector<1x256xf32>
    %23 = math.exp %22 : vector<1x256xf32>
    %cst_18 = arith.constant 1.000000e+00 : f32
    %24 = vector.broadcast %cst_18 : f32 to vector<1x256xf32>
    %25 = arith.addf %24, %23 : vector<1x256xf32>
    %26 = arith.divf %24, %25 : vector<1x256xf32>
    %27 = vector.broadcast %26 : vector<1x256xf32> to vector<32x256xf32>
    %28 = arith.mulf %3, %27 : vector<32x256xf32>
    %c0_19 = arith.constant 0 : index
    %c0_20 = arith.constant 0 : index
    %c0_21 = arith.constant 0 : index
    %29 = vector.load %arg9[%c0_19, %c0_20, %c0_21] : memref<1x32x256xf32, #tpu.memory_space<vmem>>, vector<1x32x256xf32>
    %30 = vector.shape_cast %29 : vector<1x32x256xf32> to vector<32x256xf32>
    %31 = vector.shape_cast %28 : vector<32x256xf32> to vector<1x32x256xf32>
    tpu.vector_store %arg9[%c0_19, %c0_20, %c0_21], %31 {strides = array<i32>} : memref<1x32x256xf32, #tpu.memory_space<vmem>>, vector<1x32x256xf32>,
    return
  }
  func.func @transform_0(%arg0: i32, %arg1: i32) -> (i32, i32, i32) {
    %c0_i32 = arith.constant 0 : i32
    %c0_i32_0 = arith.constant 0 : i32
    return %arg0, %c0_i32, %arg1 : i32, i32, i32
  }
  func.func @transform_1(%arg0: i32, %arg1: i32) -> (i32, i32, i32) {
    %c0_i32 = arith.constant 0 : i32
    %c0_i32_0 = arith.constant 0 : i32
    return %arg0, %c0_i32, %arg1 : i32, i32, i32
  }
  func.func @transform_2(%arg0: i32, %arg1: i32) -> (i32, i32) {
    %c0_i32 = arith.constant 0 : i32
    %c0_i32_0 = arith.constant 0 : i32
    %c0_i32_1 = arith.constant 0 : i32
    return %c0_i32, %c0_i32_0 : i32, i32
  }
  func.func @transform_3(%arg0: i32, %arg1: i32) -> (i32, i32) {
    %c0_i32 = arith.constant 0 : i32
    %c0_i32_0 = arith.constant 0 : i32
    %c0_i32_1 = arith.constant 0 : i32
    return %c0_i32, %c0_i32_0 : i32, i32
  }
  func.func @transform_4(%arg0: i32, %arg1: i32) -> (i32, i32) {
    %c0_i32 = arith.constant 0 : i32
    %c0_i32_0 = arith.constant 0 : i32
    %c0_i32_1 = arith.constant 0 : i32
    return %c0_i32, %c0_i32_0 : i32, i32
  }
  func.func @transform_5(%arg0: i32, %arg1: i32) -> (i32, i32) {
    %c0_i32 = arith.constant 0 : i32
    %c0_i32_0 = arith.constant 0 : i32
    %c0_i32_1 = arith.constant 0 : i32
    return %c0_i32, %c0_i32_0 : i32, i32
  }
  func.func @transform_6(%arg0: i32, %arg1: i32) -> (i32, i32) {
    %c0_i32 = arith.constant 0 : i32
    %c0_i32_0 = arith.constant 0 : i32
    %c0_i32_1 = arith.constant 0 : i32
    return %c0_i32, %c0_i32_0 : i32, i32
  }
  func.func @transform_7(%arg0: i32, %arg1: i32) -> (i32, i32, i32) {
    %c0_i32 = arith.constant 0 : i32
    %c0_i32_0 = arith.constant 0 : i32
    return %arg0, %c0_i32, %arg1 : i32, i32, i32
  }
}

</mosaic_0001>

<bundles_post_ra>
// kernel: attention_block.1
= control target key start
LH: loop header
LB: loop body
LE: loop exit
PB: predicated region body
PF: predicated region fallthrough
CT: control target
= control target key end

     0   :  { %s816_s26 = smov 0   ;;  %s818_s27 = smov 0   ;;  %s904_s0 = inlined_call_operand.vmem [shape: f32[2,32,256], index: 0, kind: input, shape index: {}]   ;;  %s905_s1 = inlined_call_operand.vmem [shape: f32[2,32,256], index: 1, kind: input, shape index: {}]   ;;  %s906_s2 = inlined_call_operand.vmem [shape: bf16[16,32], index: 2, kind: input, shape index: {}]   ;;  %s907_s3 = inlined_call_operand.vmem [shape: bf16[16,32], index: 3, kind: input, shape index: {}]   ;;  %s908_s4 = inlined_call_operand.vmem [shape: f32[16,1], index: 4, kind: input, shape index: {}]   ;;  %s909_s5 = inlined_call_operand.vmem [shape: bf16[1,16], index: 5, kind: input, shape index: {}]   ;;  %s910_s6 = inlined_call_operand.<no memory space> [shape: f32[1,1], index: 6, kind: input, shape index: {}]   ;;  %s911_s7 = inlined_call_operand.vmem [shape: f32[2,32,256], index: 7, kind: output, shape index: {}]  }
   0x1   :  { %v12_v0 = vstv %s910_s6  ;;  %s820_s28 = smov 0  }
   0x2   :  { %13 = vst [vmem:[#allocation2] sm:$0x1] %v12_v0 }
   0x3 LB: > { %s31_s6 = sadd.s32 1, %s766_s27  ;;  %p683_p0 = scmp.ge.s32.totalorder %s770_s28, 1  ;;  %s770_s28 = sphi %s820_s28, %s19_s28   ;;  %s766_s27 = sphi %s818_s27, %s913_s27   ;;  %s762_s26 = sphi %s816_s26, %s912_s26  }
   0x4   : > { %p33_p1 = scmp.ge.s32.totalorder %s31_s6, 2  ;;  %p277_p2 = scmp.lt.s32.totalorder %s770_s28, 3 }
   0x6   : > { %s915_s6 = smov (%p33_p1, %s31_s6), 0  ;;  %p278_p3 = pnand %p683_p0, %p277_p2 }
   0x7   : > { %p327_p4 = scmp.lt.s32.totalorder (!%p278_p3), %s762_s26, 1 }
   0x8   : > { %281 = sbr.rel (%p278_p3) target bundleno = 346 (0x15a), region = 48 }
   0xd   : > { %v458_v1 = vld [vmem:[%s908_s4] sm:$0xff]  ;;  %v772_v2 = vmov 0   ;;  %s917_s26 = smov (!%p327_p4, %s762_s26), 1  ;;  %v459_v6 = vld [vmem:[%s908_s4 + $0x8] sm:$0xff]  ;;  %vm390_vm0 = vcmask 261120   ;;  %vm488_vm1 = vcmask 130048  }
   0xe   : > { %738 = vset.pattern.permute.xlu0 %v772_v2  ;;  %739 = vset.pattern.permute.xlu1 %v772_v2  ;;  %s837_s8 = sshll.u32 %s917_s26, 6  ;;  %v712_v28 = vld [vmem:[%s907_s3] sm:$0xff] }
   0xf   : > { %462 = vperm.xlu0 %738, %v458_v1   ;;  %s344_s11 = scalar_lea.vmem %s905_s1, %s837_s8  ;;  %s334_s14 = scalar_lea.vmem %s904_s0, %s837_s8  ;;  %v711_v29 = vld [vmem:[%s906_s2] sm:$0xff] }
  0x10   : > { %v843_v3 = vld [vmem:[%s344_s11 + $0x20] sm:$0xff]  ;;  %v845_v4 = vld [vmem:[%s344_s11 + $0x30] sm:$0xff]  ;;  %v847_v5 = vld [vmem:[%s344_s11 + $0x28] sm:$0xff]  ;;  %s354_s25 = scalar_lea.vmem %s911_s7, %s837_s8 }
  0x11   : > { %v383_v7 = vpack.c.bf16 %v845_v4, %v843_v3  ;;  %v858_v8 = vld [vmem:[%s344_s11 + $0x38] sm:$0xff]  ;;  %v361_v9 = vld [vmem:[%s334_s14 + $0x20] sm:$0xff]  ;;  %v363_v10 = vld [vmem:[%s334_s14 + $0x30] sm:$0xff] }
  0x12   : > { %v384_v11 = vpack.c.bf16 %v858_v8, %v847_v5  ;;  %v377_v12 = vpack.c.bf16 %v363_v10, %v361_v9  ;;  %v362_v13 = vld [vmem:[%s334_s14 + $0x28] sm:$0xff]  ;;  %v364_v14 = vld [vmem:[%s334_s14 + $0x38] sm:$0xff]  ;;  %v862_v15 = vld [vmem:[%s344_s11] sm:$0xff] }
  0x13   : > { %400 = vmatpush.bf16.msra.mxu0 %v383_v7  ;;  %v378_v16 = vpack.c.bf16 %v364_v14, %v362_v13  ;;  %v864_v17 = vld [vmem:[%s344_s11 + $0x10] sm:$0xff]  ;;  %v866_v18 = vld [vmem:[%s344_s11 + $0x8] sm:$0xff]  ;;  %v868_v19 = vld [vmem:[%s344_s11 + $0x18] sm:$0xff] }
  0x14   : > { %414 = vmatpush.bf16.msra.mxu1 %v384_v11  ;;  %436 = vmatpush.bf16.msra.mxu2 %v377_v12  ;;  %v381_v20 = vpack.c.bf16 %v864_v17, %v862_v15  ;;  %v382_v21 = vpack.c.bf16 %v868_v19, %v866_v18  ;;  %v357_v22 = vld [vmem:[%s334_s14] sm:$0xff]  ;;  %v359_v23 = vld [vmem:[%s334_s14 + $0x10] sm:$0xff]  ;;  %v358_v24 = vld [vmem:[%s334_s14 + $0x8] sm:$0xff] }
  0x15   : > { %450 = vmatpush.bf16.msra.mxu3 %v378_v16  ;;  %v375_v25 = vpack.c.bf16 %v359_v23, %v357_v22  ;;  %v360_v26 = vld [vmem:[%s334_s14 + $0x18] sm:$0xff]  ;;  %v481_v30 = vld [vmem:[#allocation2] sm:$0x1] }
  0x16   : > { %v376_v27 = vpack.c.bf16 %v360_v26, %v358_v24  ;;  %484 = vperm.xlu1 %739, %v481_v30   ;;  %v478_v55 = vld [vmem:[%s909_s5] sm:$0x1] }
  0x17   : > { %467 = vperm.xlu0 %738, %v459_v6   ;;  %401 = vmatpush.bf16.msra.mxu0 %v381_v20 }
  0x18   : > { %415 = vmatpush.bf16.msra.mxu1 %v382_v21  ;;  %437 = vmatpush.bf16.msra.mxu2 %v375_v25 }
  0x19   : > { %451 = vmatpush.bf16.msra.mxu3 %v376_v27 }
  0x1a   : > { %694 = vmatmul.msk.bf16.vlgmr.msra.gmra.mxu0 %vm390_vm0, %v712_v28 }
  0x1b   : > { %695 = vmatmul.msk.bf16.vlgmr.msra.gmra.mxu1 %vm390_vm0, %v712_v28  ;;  %700 = vmatmul.msk.bf16.vlgmr.msra.gmra.mxu2 %vm390_vm0, %v711_v29 }
  0x1c   : > { %701 = vmatmul.msk.bf16.vlgmr.msra.gmra.mxu3 %vm390_vm0, %v711_v29 }
  0x81   : > { %v463_v33 = vpop.permute.xlu0 %462 }
  0x88   : > { %v485_v56 = vpop.permute.xlu1 %484 }
  0x89   : > { %v468_v45 = vpop.permute.xlu0 %467  ;;  %v487_v57 = vperm.slane %v485_v56, 0 }
  0x97   : > { %v403_v31 = vpop.f32.mrf.mxu0 }
  0x98   : > { %v417_v32 = vpop.f32.mrf.mxu1 }
  0x9e   : > { %v439_v34 = vpop.f32.mrf.mxu2 }
  0x9f   : > { %v453_v35 = vpop.f32.mrf.mxu3  ;;  %v440_v36 = vadd.f32 %v439_v34, %v403_v31  ;;  %v405_v38 = vpop.f32.mrf.mxu0 }
  0xa0   : > { %v454_v37 = vadd.f32 %v453_v35, %v417_v32  ;;  %v419_v41 = vpop.f32.mrf.mxu1 }
  0xa1   : > { %v470_v40 = vadd.f32 %v463_v33, %v440_v36 }
  0xa2   : > { %v471_v44 = vadd.f32 %v463_v33, %v454_v37 }
  0xa3   : > { %v474_v49 = vmax.f32 %v470_v40, 0.0 }
  0xa4   : > { %v475_v51 = vmax.f32 %v471_v44, 0.0 }
  0xa6   : > { %v441_v39 = vpop.f32.mrf.mxu2 }
  0xa7   : > { %v442_v42 = vadd.f32 %v441_v39, %v405_v38  ;;  %v455_v43 = vpop.f32.mrf.mxu3 }
  0xa8   : > { %v456_v46 = vadd.f32 %v455_v43, %v419_v41 }
  0xa9   : > { %v472_v47 = vadd.f32 %v468_v45, %v442_v42 }
  0xaa   : > { %v473_v48 = vadd.f32 %v468_v45, %v456_v46 }
  0xab   : > { %v476_v50 = vmax.f32 %v472_v47, 0.0 }
  0xac   : > { %v477_v52 = vmax.f32 %v473_v48, 0.0 }
  0xad   : > { %v479_v53 = vpack.c.bf16 %v476_v50, %v474_v49 }
  0xae   : > { %v480_v54 = vpack.c.bf16 %v477_v52, %v475_v51 }
  0xaf   : > { %499 = vmatpush.bf16.msrb.mxu0 %v479_v53 }
  0xb0   : > { %512 = vmatpush.bf16.msrb.mxu1 %v480_v54 }
  0xb2   : > { %702 = vmatmul.msk.bf16.vlgmr.msrb.gmra.mxu0 %vm488_vm1, %v478_v55 }
  0xb3   : > { %703 = vmatmul.msk.bf16.vlgmr.msrb.gmra.mxu1 %vm488_vm1, %v478_v55 }
 0x12f   : > { %v501_v58 = vpop.f32.mrf.mxu0 }
 0x130   : > { %v502_v59 = vadd.f32 %v501_v58, %v487_v57  ;;  %v514_v60 = vpop.f32.mrf.mxu1 }
 0x131   : > { %v515_v61 = vadd.f32 %v514_v60, %v487_v57 }
 0x132   : > { %v704_v62 = vmul.f32 -1.442695, %v502_v59 }
 0x133   : > { %v705_v63 = vmul.f32 -1.442695, %v515_v61 }
 0x134   : > { %740 = vpow2.f32 %v704_v62 }
 0x135   : > { %742 = vpow2.f32 %v705_v63 }
 0x137   : > { %v503_v0 = vpop.f32.mrf.mxu0 }
 0x138   : > { %v516_v1 = vpop.f32.mrf.mxu1 }
 0x13a   : > { %v741_v2 = vpop.eup %740 }
 0x13b   : > { %v743_v6 = vpop.eup %742  ;;  %v524_v7 = vadd.f32 1.0, %v741_v2 }
 0x13c   : > { %v525_v9 = vadd.f32 1.0, %v743_v6 }
 0x13d   : > { %744 = vrcp.f32 %v524_v7  ;;  %v537_v16 = vand.u32 2147483648, %v524_v7  ;;  %v535_v22 = vand.u32 2147483647, %v524_v7  ;;  %vm531_vm4 = vweird.f32 %v524_v7 }
 0x13e   : > { %746 = vrcp.f32 %v525_v9  ;;  %v552_v23 = vand.u32 2147483648, %v525_v9  ;;  %v550_v25 = vand.u32 2147483647, %v525_v9  ;;  %vm546_vm6 = vweird.f32 %v525_v9 }
 0x13f   : > { %v538_v27 = vor.u32 1.1754944e-38, %v537_v16  ;;  %vm536_vm7 = vcmp.eq.f32.partialorder %v535_v22, 8.507059e+37 }
 0x140   : > { %v553_v30 = vor.u32 1.1754944e-38, %v552_v23  ;;  %vm551_vm9 = vcmp.eq.f32.partialorder %v550_v25, 8.507059e+37 }
 0x143   : > { %v745_v10 = vpop.eup %744 }
 0x144   : > { %v747_v11 = vpop.eup %746  ;;  %v527_v12 = vmul.f32 %v745_v10, %v524_v7  ;;  %vm532_vm2 = vweird.f32 %v745_v10 }
 0x145   : > { %v542_v13 = vmul.f32 %v747_v11, %v525_v9  ;;  %vm547_vm3 = vweird.f32 %v747_v11  ;;  %vm533_vm5 = vmor %vm531_vm4, %vm532_vm2 }
 0x146   : > { %v528_v14 = vsub.f32 1.0, %v527_v12  ;;  %vm548_vm8 = vmor %vm546_vm6, %vm547_vm3 }
 0x147   : > { %v543_v20 = vsub.f32 1.0, %v542_v13 }
 0x148   : > { %v529_v21 = vmul.f32 %v745_v10, %v528_v14 }
 0x149   : > { %v544_v24 = vmul.f32 %v747_v11, %v543_v20 }
 0x14a   : > { %v530_v26 = vadd.f32 %v745_v10, %v529_v21 }
 0x14b   : > { %v545_v28 = vadd.f32 %v747_v11, %v544_v24 }
 0x14c   : > { %v534_v29 = vsel %vm533_vm5, %v745_v10, %v530_v26 }
 0x14d   : > { %v539_v31 = vsel %vm536_vm7, %v538_v27, %v534_v29  ;;  %v549_v32 = vsel %vm548_vm8, %v747_v11, %v545_v28 }
 0x14e   : > { %v556_v33 = vperm.slane %v539_v31, 0  ;;  %v554_v34 = vsel %vm551_vm9, %v553_v30, %v549_v32 }
 0x14f   : > { %v557_v35 = vperm.slane %v554_v34, 0 }
 0x150   : > { %v558_v36 = vmul.f32 %v556_v33, %v862_v15  ;;  %v560_v37 = vmul.f32 %v556_v33, %v864_v17  ;;  %v562_v38 = vmul.f32 %v556_v33, %v843_v3  ;;  %v564_v39 = vmul.f32 %v556_v33, %v845_v4 }
 0x151   : > { %v559_v40 = vmul.f32 %v557_v35, %v866_v18  ;;  %v561_v41 = vmul.f32 %v557_v35, %v868_v19  ;;  %v563_v42 = vmul.f32 %v557_v35, %v847_v5  ;;  %v565_v43 = vmul.f32 %v557_v35, %v858_v8 }
 0x152   : > { %566 = vst [vmem:[%s354_s25] sm:$0xff] %v558_v36 }
 0x153   : > { %568 = vst [vmem:[%s354_s25 + $0x10] sm:$0xff] %v560_v37 }
 0x154   : > { %570 = vst [vmem:[%s354_s25 + $0x20] sm:$0xff] %v562_v38 }
 0x155   : > { %572 = vst [vmem:[%s354_s25 + $0x30] sm:$0xff] %v564_v39 }
 0x156   : > { %567 = vst [vmem:[%s354_s25 + $0x8] sm:$0xff] %v559_v40 }
 0x157   : > { %569 = vst [vmem:[%s354_s25 + $0x18] sm:$0xff] %v561_v41 }
 0x158   : > { %571 = vst [vmem:[%s354_s25 + $0x28] sm:$0xff] %v563_v42 }
 0x159   : > { %573 = vst [vmem:[%s354_s25 + $0x38] sm:$0xff] %v565_v43 }
 0x15a PF: > { %s19_s28 = sadd.s32 1, %s770_s28   ;;  %s912_s26 = smov %s766_s27 }
 0x15b   : > { %p16_p5 = scmp.ge.s32.totalorder %s19_s28, 4   ;;  %s913_s27 = smov %s915_s6 }
 0x15d   :  { %18 = sbr.rel (!%p16_p5) target bundleno = 3 (0x3), region = 81 }

</bundles_post_ra>
